<compile_context>
chip_gen: v7x
topology: tpu7x:2x2x1
jax: 0.10.0
libtpu: 0.0.40
codegen_flags: <defaults>
</compile_context>

<pallas_src>
import functools

import jax
import jax.numpy as jnp
from jax.experimental import pallas as pl
from jax.experimental.pallas import tpu as pltpu

_LANES = 128
_SUBLANES = 8


def _focal_loss_kernel(p_ref, partial_ref, *, gamma):
    """One grid step: compute focal loss on a (rows_per_block, 128) tile and
    write its (8, 128) partial sum."""
    p = p_ref[...].astype(jnp.float32)
    neg_log_p = -jnp.log(p)

    g = float(gamma)
    if g == 0.0:
        # (1-p)**0 == 1 everywhere (torch: 0**0 == 1 as well)
        loss = neg_log_p
    elif g.is_integer() and g <= 8.0:
        # Small integer gamma: repeated VPU multiplies, no extra EUP transcendentals.
        one_m_p = 1.0 - p
        mod = one_m_p
        for _ in range(int(g) - 1):
            mod = mod * one_m_p
        loss = mod * neg_log_p
    else:
        # pow(1-p, g) == exp(g * log(1-p)); at p==1: log(0) = -inf -> exp = 0,
        # matching torch's pow(0, g) == 0 for g > 0.
        loss = jnp.exp(jnp.float32(g) * jnp.log(1.0 - p)) * neg_log_p

    rows = loss.shape[0]  # static, multiple of 8 (guaranteed by the wrapper)
    # Sublane-split reshape (layout-free) + leading-axis sum = pure vreg adds.
    partial = loss.reshape(rows // _SUBLANES, _SUBLANES, _LANES).sum(axis=0)
    partial_ref[...] = partial


def focal_loss_pallas(prob, gamma=0.0, *, rows_per_block=1024):
    """Pallas implementation of focal_loss(prob, gamma) = mean focal loss."""
    assert gamma >= 0
    assert rows_per_block % _SUBLANES == 0
    n_elems = prob.size

    flat = prob.reshape(-1)  # free for contiguous data; dtype cast happens in-kernel

    rows = pl.cdiv(n_elems, _LANES)
    if rows <= rows_per_block:
        # Single block covering the whole (rounded-up-to-8-rows) array.
        rpb = _SUBLANES * pl.cdiv(rows, _SUBLANES)
        num_blocks = 1
    else:
        rpb = rows_per_block
        num_blocks = pl.cdiv(rows, rpb)
    rows_padded = num_blocks * rpb

    pad = rows_padded * _LANES - n_elems
    if pad:
        # Pad value 1.0 contributes exactly 0: (1-1)^g * -log(1) == 0.
        # (Only taken when n is not a multiple of 8*128; not hit by the test shape.)
        flat = jnp.concatenate([flat, jnp.ones((pad,), flat.dtype)])
    slab = flat.reshape(rows_padded, _LANES)

    partials = pl.pallas_call(
        functools.partial(_focal_loss_kernel, gamma=float(gamma)),
        out_shape=jax.ShapeDtypeStruct((num_blocks * _SUBLANES, _LANES), jnp.float32),
        grid_spec=pltpu.PrefetchScalarGridSpec(
            num_scalar_prefetch=0,
            grid=(num_blocks,),
            in_specs=[pl.BlockSpec((rpb, _LANES), lambda i: (i, 0))],
            out_specs=pl.BlockSpec((_SUBLANES, _LANES), lambda i: (i, 0)),
        ),
        compiler_params=pltpu.CompilerParams(
            dimension_semantics=("parallel",),
        ),
    )(slab)

    # Tiny tree reduce of per-block partials (more accurate than a serial scalar).
    return jnp.sum(partials) / jnp.float32(n_elems)


def focal_loss_ref(prob, gamma):
    """Pure-JAX reference matching the PyTorch focal_loss."""
    return jnp.mean((1.0 - prob) ** gamma * -jnp.log(prob))


if __name__ == "__main__":
    key = jax.random.PRNGKey(0)
    # Probabilities in (0, 1), NCHW like a sigmoid/softmax output.
    x = jax.random.uniform(
        key, (2, 4, 16, 16), dtype=jnp.float32, minval=1e-3, maxval=1.0 - 1e-3
    )

    # gamma=2.0 exercises the integer-gamma fast path.
    out = jax.block_until_ready(focal_loss_pallas(x, gamma=2.0))
    ref = focal_loss_ref(x, 2.0)
    assert jnp.allclose(out, ref, rtol=1e-5, atol=1e-6), (out, ref)

    # Module default gamma=0.0 path.
    out0 = jax.block_until_ready(focal_loss_pallas(x, gamma=0.0))
    ref0 = focal_loss_ref(x, 0.0)
    assert jnp.allclose(out0, ref0, rtol=1e-5, atol=1e-6), (out0, ref0)

    # Non-integer gamma path (exp(g*log(1-p))).
    outh = jax.block_until_ready(focal_loss_pallas(x, gamma=0.5))
    refh = focal_loss_ref(x, 0.5)
    assert jnp.allclose(outh, refh, rtol=1e-5, atol=1e-6), (outh, refh)

    print("KERNEL_OK")
</pallas_src>

<mosaic_0001>
module attributes {stable_mosaic.version = 11 : i64} {
  func.func @_focal_loss_kernel(%arg0: i32, %arg1: memref<16x128xf32, #tpu.memory_space<vmem>>, %arg2: memref<8x128xf32, #tpu.memory_space<vmem>>) attributes {dimension_semantics = [#tpu.dimension_semantics<parallel>], iteration_bounds = array<i64: 1>, scalar_prefetch = 0 : i64, scratch_operands = 0 : i64, tpu.core_type = #tpu.core_type<tc>, window_params = [{transform_indices = @transform_0, window_bounds = array<i64: 16, 128>}, {transform_indices = @transform_1, window_bounds = array<i64: 8, 128>}]} {
    %c0 = arith.constant 0 : index
    %c0_0 = arith.constant 0 : index
    %0 = vector.load %arg1[%c0, %c0_0] : memref<16x128xf32, #tpu.memory_space<vmem>>, vector<16x128xf32>
    %1 = math.log %0 : vector<16x128xf32>
    %cst = arith.constant 0.000000e+00 : f32
    %2 = vector.broadcast %cst : f32 to vector<16x128xf32>
    %3 = arith.subf %2, %1 : vector<16x128xf32>
    %cst_1 = arith.constant 1.000000e+00 : f32
    %4 = vector.broadcast %cst_1 : f32 to vector<16x128xf32>
    %5 = arith.subf %4, %0 : vector<16x128xf32>
    %6 = arith.mulf %5, %5 : vector<16x128xf32>
    %7 = arith.mulf %6, %3 : vector<16x128xf32>
    %8 = vector.shape_cast %7 : vector<16x128xf32> to vector<2x8x128xf32>
    %cst_2 = arith.constant dense<0.000000e+00> : vector<8x128xf32>
    %9 = vector.multi_reduction <add>, %8, %cst_2 [0] : vector<2x8x128xf32> to vector<8x128xf32>
    %c0_3 = arith.constant 0 : index
    %c0_4 = arith.constant 0 : index
    %10 = vector.load %arg2[%c0_3, %c0_4] : memref<8x128xf32, #tpu.memory_space<vmem>>, vector<8x128xf32>
    tpu.vector_store %arg2[%c0_3, %c0_4], %9 {strides = array<i32>} : memref<8x128xf32, #tpu.memory_space<vmem>>, vector<8x128xf32>,
    return
  }
  func.func @transform_0(%arg0: i32) -> (i32, i32) {
    %c0_i32 = arith.constant 0 : i32
    %c0_i32_0 = arith.constant 0 : i32
    return %arg0, %c0_i32 : i32, i32
  }
  func.func @transform_1(%arg0: i32) -> (i32, i32) {
    %c0_i32 = arith.constant 0 : i32
    %c0_i32_0 = arith.constant 0 : i32
    return %arg0, %c0_i32 : i32, i32
  }
}

</mosaic_0001>

<bundles_post_ra>
// kernel: tpu_custom_call.1
= control target key start
LH: loop header
LB: loop body
LE: loop exit
PB: predicated region body
PF: predicated region fallthrough
CT: control target
= control target key end

     0   :  { %6 = vsyncpa [#allocation3], 0  ;;  %s148_s0 = inlined_call_operand.hbm [shape: f32[16,128], index: 0, kind: input, shape index: {}]   ;;  %s149_s1 = inlined_call_operand.hbm [shape: f32[8,128], index: 1, kind: output, shape index: {}]  }
   0x1   :  { %7 = vsyncpa [#allocation4], 0  ;;  %s110_s6 = smov [#allocation2]   ;;  %s62_s10 = scalar_lea.hbm %s148_s0, 256 }
   0x2   :  { %s13_s7 = sshll.u32 %s110_s6, 4  ;;  %p63_p0 = scmp.ne.s32.totalorder %s148_s0, %s62_s10  ;;  %s14_s7 = int_to_ptr.vmem [resolvable:$true] %s13_s7 }
   0x3   :  { %p66_p1 = scmp.lt.u32.totalorder %s62_s10, %s148_s0 }
   0x5   :  { %p68_p2 = pnand %p66_p1, %p63_p0 }
   0x7   :  { %71 = shalt.err (!%p68_p2)
}
   0x8   :  { %s72_s15 = scalar_lea.vmem %s14_s7, 256  ;;  %p77_p4 = scmp.lt.s32.totalorder %s14_s7, %s14_s7 }
   0x9   :  { %p73_p3 = scmp.ne.s32.totalorder %s14_s7, %s72_s15  ;;  %p78_p5 = scmp.lt.s32.totalorder %s72_s15, %s72_s15 }
   0xb   :  { %p79_p6 = por %p78_p5, %p77_p4 }
   0xd   :  { %p80_p7 = pnand %p79_p6, %p73_p3 }
   0xf   :  { %83 = shalt.err (!%p80_p7)
}
  0x10   :  { %s111_s16 = smov 128   ;;  %s112_s17 = smov 8  }
  0x11   :  { %19 = dma.hbm_to_vmem [thread:$0]  %s148_s0, 256, %s14_s7, [#allocation3], %s111_s16, %s111_s16, %s112_s17  }
  0x12   :  { %106 = dma.done.wait [#allocation3], 256  }
  0x13   :  { %107 = vsyncadd [#allocation3], 4294967040  ;;  %v23_v0 = vld [vmem:[#allocation2] sm:$0xff]  ;;  %v24_v1 = vld [vmem:[#allocation2 + $0x8] sm:$0xff]  ;;  %s113_s20 = smov [#allocation5]  }
  0x14   :  { %58 = vlog2.f32 %v23_v0  ;;  %v31_v2 = vsub.f32 1.0, %v23_v0  ;;  %v32_v3 = vsub.f32 1.0, %v24_v1  ;;  %s45_s21 = sshll.u32 %s113_s20, 4  ;;  %s46_s21 = int_to_ptr.vmem [resolvable:$true] %s45_s21 }
  0x15   :  { %60 = vlog2.f32 %v24_v1  ;;  %s84_s0 = scalar_lea.vmem %s46_s21, 128  ;;  %p89_p9 = scmp.lt.s32.totalorder %s46_s21, %s46_s21 }
  0x16   :  { %v33_v7 = vmul.f32 %v31_v2, %v31_v2  ;;  %v34_v9 = vmul.f32 %v32_v3, %v32_v3  ;;  %p85_p8 = scmp.ne.s32.totalorder %s46_s21, %s84_s0  ;;  %p90_p10 = scmp.lt.s32.totalorder %s84_s0, %s84_s0 }
  0x18   :  { %p91_p11 = por %p90_p10, %p89_p9 }
  0x1a   :  { %p92_p12 = pnand %p91_p11, %p85_p8 }
  0x1e   :  { %v59_v4 = vpop.eup %58 }
  0x1f   :  { %v61_v5 = vpop.eup %60  ;;  %v26_v6 = vmul.f32 0.6931472, %v59_v4 }
  0x20   :  { %v28_v8 = vmul.f32 0.6931472, %v61_v5 }
  0x21   :  { %v29_v10 = vsub.f32 0.0, %v26_v6 }
  0x22   :  { %v30_v11 = vsub.f32 0.0, %v28_v8 }
  0x23   :  { %v35_v12 = vmul.f32 %v33_v7, %v29_v10 }
  0x24   :  { %v36_v13 = vmul.f32 %v34_v9, %v30_v11 }
  0x26   :  { %v37_v14 = vadd.f32 %v36_v13, %v35_v12 }
  0x28   :  { %38 = vst [vmem:[#allocation5] sm:$0xff] %v37_v14 }
  0x29   :  { %95 = shalt.err (!%p92_p12)
}
  0x2a   :  { %s96_s24 = scalar_lea.hbm %s149_s1, 128 }
  0x2b   :  { %p97_p13 = scmp.ne.s32.totalorder %s149_s1, %s96_s24  ;;  %p100_p0 = scmp.lt.u32.totalorder %s96_s24, %s149_s1 }
  0x2d   :  { %p102_p1 = pnand %p100_p0, %p97_p13 }
  0x2f   :  { %105 = shalt.err (!%p102_p1)
}
  0x30   :  { %48 = dma.vmem_to_hbm [thread:$0]  %s46_s21, 128, %s149_s1, [#allocation4]  }
  0x31   :  { %108 = dma.done.wait [#allocation4], 128  }
  0x32   :  { %109 = vsyncadd [#allocation4], 4294967168 }
  0x33   :  { %52 = vsyncpa [#allocation3], 1 }
  0x34   :  { %53 = vsyncpa [#allocation4], 1 }

</bundles_post_ra>
